<compile_context>
chip_gen: v6e
topology: v6e:2x2x1
jax: 0.10.0
libtpu: 0.0.40
codegen_flags: <defaults>
</compile_context>

<pallas_src>
import jax
import jax.numpy as jnp
from jax.experimental import pallas as pl
from jax.experimental.pallas import tpu as pltpu

_LANE = 128


def _round_up(x, m):
    return ((x + m - 1) // m) * m


def _tensorcores_per_device():
    """Best-effort TensorCore count per device (2 on v7x, 1 on v5e/v6e)."""
    try:
        dev = jax.devices()[0]
        for attr in ("num_cores", "core_count"):
            v = getattr(dev, attr, None)
            if isinstance(v, int) and v > 1:
                return v
        if "v7" in str(getattr(dev, "device_kind", "")).lower():
            return 2
    except Exception:
        pass
    return 1


def _mlp_physico_fused_kernel(x_ref, affine_ref, w_ref, b_ref, o_ref):
    # BatchNorm1d (eval) folded to a per-feature affine, then ReLU (f32 on the VPU).
    x = x_ref[...]
    scale = affine_ref[0:1, :]                 # (1, K) broadcasts over the batch tile
    shift = affine_ref[1:2, :]
    h = jnp.maximum(x * scale + shift, 0.0)
    # Single fused matmul: relu(bn(x)) @ kron(I_G, W1@W2) + bias.  Dropout is identity (eval).
    h = h.astype(w_ref.dtype)                  # optional bf16 operands; accumulation stays f32
    y = jnp.dot(h, w_ref[...], preferred_element_type=jnp.float32) + b_ref[...]
    o_ref[...] = y.astype(o_ref.dtype)


def prepare_fused_params(params, *, eps=1e-5, matmul_dtype=jnp.float32):
    """One-time prep per weight set: BN fold, W1@W2 fusion, G-fold (kron) layout, casts."""
    D_in = params["w1"].shape[0]
    D_out = params["w2"].shape[1]

    inv_std = jax.lax.rsqrt(params["bn_running_var"] + eps)
    scale = params["bn_weight"] * inv_std                              # (D_in,)
    shift = params["bn_bias"] - params["bn_running_mean"] * scale      # (D_in,)

    w_fused = params["w1"] @ params["w2"]                              # (D_in, D_out)
    b_fused = (params["b1"] @ params["w2"] + params["b2"]).reshape(-1)  # (D_out,)

    # Fold G batch rows into the lane dim so the output row is exactly 128 lanes wide.
    if D_out < _LANE and _LANE % D_out == 0:
        G = _LANE // D_out
    else:
        G = 1

    if G > 1:
        # Block-diagonal weight: row g*D_in+k, col g*D_out+j holds W_fused[k, j].
        w = jnp.kron(jnp.eye(G, dtype=w_fused.dtype), w_fused)        # (G*D_in, G*D_out)
        b = jnp.tile(b_fused, G).reshape(1, G * D_out)
        affine = jnp.stack([jnp.tile(scale, G), jnp.tile(shift, G)], axis=0)  # (2, G*D_in)
    else:
        n_p = _round_up(max(D_out, _LANE), _LANE)
        w = jnp.pad(w_fused, ((0, 0), (0, n_p - D_out)))
        b = jnp.pad(b_fused, ((0, n_p - D_out),)).reshape(1, n_p)
        affine = jnp.stack([scale, shift], axis=0)

    return {
        "w": w.astype(matmul_dtype),
        "b": b.astype(jnp.float32),
        "affine": affine.astype(jnp.float32),
        "G": int(G),
        "D_in": int(D_in),
        "D_out": int(D_out),
    }


def mlp_physico_forward(x, fused, *, block_batch=4096, vmem_budget_bytes=12 * (1 << 20)):
    """x: (B, input_dim) float32.  fused: output of prepare_fused_params (hoisted prep)."""
    B, D_in = x.shape
    assert D_in == fused["D_in"], "input_dim mismatch with prepared params"
    G = fused["G"]
    D_out = fused["D_out"]
    w, b, affine = fused["w"], fused["b"], fused["affine"]
    k_dim = w.shape[0]            # G * D_in   (or D_in if G == 1)
    n_p = w.shape[1]              # G * D_out  (or D_out rounded up to 128)
    row_align = 8 * G             # batch rows per (sublane x fold) granule

    # ---- batch tile selection (big tiles amortize ~0.35us/step overhead) ----
    tb = _round_up(min(block_batch, _round_up(B, row_align)), row_align)

    # v7x (2 TCs/chip): make the tile count a multiple of the core count so the "parallel"
    # batch axis shards evenly.  On 1-TC parts (v5e/v6e) the grid is serial: don't split.
    ncores = _tensorcores_per_device()
    if ncores > 1 and B >= ncores * row_align:
        tiles = -(-B // tb)
        if tiles % ncores != 0:
            tiles = max(ncores, _round_up(tiles, ncores))
            tb = _round_up(-(-B // tiles), row_align)

    # VMEM guard: double-buffered x/out tiles + resident weight must fit comfortably inside
    # the default scoped VMEM on every generation (16 MiB v5e, 32 MiB v6e/v7x).
    def _vmem_bytes(tb_):
        tbf_ = tb_ // G
        return (2 * (tbf_ * k_dim * 4 + tbf_ * n_p * 4)
                + k_dim * n_p * w.dtype.itemsize + (2 * k_dim + n_p) * 4)

    while tb > row_align and _vmem_bytes(tb) > vmem_budget_bytes:
        tb = max(row_align, _round_up(tb // 2, row_align))

    B_p = _round_up(B, tb)
    if B_p != B:
        x = jnp.pad(x, ((0, B_p - B), (0, 0)))

    # Fold G batch rows into the lane dimension (free row-major reshape): full-lane loads,
    # full-lane stores, no zero-padding of the output feature dim.
    rows_p = B_p // G
    xf = x.reshape(rows_p, G * D_in) if G > 1 else x
    tbf = tb // G
    grid = (rows_p // tbf,)

    flops = 2 * rows_p * k_dim * n_p
    bytes_accessed = (rows_p * k_dim * 4 + k_dim * n_p * w.dtype.itemsize
                      + n_p * 4 + 2 * k_dim * 4 + rows_p * n_p * 4)

    out = pl.pallas_call(
        _mlp_physico_fused_kernel,
        out_shape=jax.ShapeDtypeStruct((rows_p, n_p), jnp.float32),
        grid=grid,
        in_specs=[
            pl.BlockSpec((tbf, k_dim), lambda i: (i, 0)),      # folded x: tiled over batch
            pl.BlockSpec((2, k_dim), lambda i: (0, 0)),        # packed BN scale/shift (resident)
            pl.BlockSpec((k_dim, n_p), lambda i: (0, 0)),      # fused block-diag weight (resident)
            pl.BlockSpec((1, n_p), lambda i: (0, 0)),          # fused bias (resident)
        ],
        out_specs=pl.BlockSpec((tbf, n_p), lambda i: (i, 0)),
        compiler_params=pltpu.CompilerParams(
            dimension_semantics=("parallel",),                 # independent batch tiles
        ),
        cost_estimate=pl.CostEstimate(
            flops=flops, transcendentals=0, bytes_accessed=bytes_accessed),
    )(xf, affine, w, b)

    if G > 1:
        return out.reshape(B_p, D_out)[:B]                     # free row-major unfold + slice
    return out[:B, :D_out]


def init_params(key, input_dim, hidden_dim, output_dim):
    """Deterministic, PyTorch-default-style initialization (uniform +/- 1/sqrt(fan_in))."""
    k1, k2, k3, k4 = jax.random.split(key, 4)
    bound1 = 1.0 / jnp.sqrt(jnp.array(input_dim, jnp.float32))
    bound2 = 1.0 / jnp.sqrt(jnp.array(hidden_dim, jnp.float32))
    return {
        # BatchNorm1d defaults: weight=1, bias=0, running_mean=0, running_var=1.
        # Perturb running stats slightly so the BN affine is non-trivial but deterministic.
        "bn_weight": jnp.ones((input_dim,), jnp.float32),
        "bn_bias": jnp.zeros((input_dim,), jnp.float32),
        "bn_running_mean": 0.1 * jnp.arange(input_dim, dtype=jnp.float32) / input_dim,
        "bn_running_var": jnp.ones((input_dim,), jnp.float32),
        # layer1: (in, hidden) so the math is x @ W1
        "w1": jax.random.uniform(k1, (input_dim, hidden_dim), jnp.float32, -bound1, bound1),
        "b1": jax.random.uniform(k2, (1, hidden_dim), jnp.float32, -bound1, bound1),
        # final_layer: (hidden, out)
        "w2": jax.random.uniform(k3, (hidden_dim, output_dim), jnp.float32, -bound2, bound2),
        "b2": jax.random.uniform(k4, (1, output_dim), jnp.float32, -bound2, bound2),
    }


def reference_forward(x, params):
    """Plain-JAX reference (matches the PyTorch module in eval mode)."""
    eps = 1e-5
    inv_std = 1.0 / jnp.sqrt(params["bn_running_var"] + eps)
    h = (x - params["bn_running_mean"]) * inv_std * params["bn_weight"] + params["bn_bias"]
    h = jnp.maximum(h, 0.0)
    y1 = h @ params["w1"] + params["b1"]
    y2 = y1 @ params["w2"] + params["b2"]
    return y2


if __name__ == "__main__":
    key = jax.random.PRNGKey(0)
    kx, kp = jax.random.split(key)

    batch = 256
    input_dim = 32
    hidden_dim = 64
    output_dim = 8

    x = jax.random.normal(kx, (batch, input_dim), dtype=jnp.float32)
    params = init_params(kp, input_dim, hidden_dim, output_dim)
    ref = reference_forward(x, params)

    # f32 matmul path: differences only from the W1@W2 fusion's reassociation.
    fused_f32 = prepare_fused_params(params, matmul_dtype=jnp.float32)   # one-time prep
    out = jax.block_until_ready(mlp_physico_forward(x, fused_f32))
    assert out.shape == (batch, output_dim)
    assert jnp.allclose(out, ref, atol=1e-4, rtol=1e-4), "f32 mismatch vs reference"

    # bf16-operand / f32-accumulate path (halves resident-weight DMA on v6e/v7x).
    fused_bf16 = prepare_fused_params(params, matmul_dtype=jnp.bfloat16)
    out_bf16 = jax.block_until_ready(mlp_physico_forward(x, fused_bf16))
    assert out_bf16.shape == (batch, output_dim)
    assert jnp.allclose(out_bf16, ref, atol=5e-2, rtol=5e-2), "bf16 mismatch vs reference"

    print("KERNEL_OK")
</pallas_src>

<mosaic_0001>
module attributes {stable_mosaic.version = 11 : i64} {
  func.func @_mlp_physico_fused_kernel(%arg0: i32, %arg1: memref<16x512xf32, #tpu.memory_space<vmem>>, %arg2: memref<2x512xf32, #tpu.memory_space<vmem>>, %arg3: memref<512x128xf32, #tpu.memory_space<vmem>>, %arg4: memref<1x128xf32, #tpu.memory_space<vmem>>, %arg5: memref<16x128xf32, #tpu.memory_space<vmem>>) attributes {dimension_semantics = [#tpu.dimension_semantics<parallel>], iteration_bounds = array<i64: 1>, scalar_prefetch = 0 : i64, scratch_operands = 0 : i64, tpu.core_type = #tpu.core_type<tc>, window_params = [{transform_indices = @transform_0, window_bounds = array<i64: 16, 512>}, {pipeline_mode = #tpu.pipeline_mode<synchronous>, transform_indices = @transform_1, window_bounds = array<i64: 2, 512>}, {pipeline_mode = #tpu.pipeline_mode<synchronous>, transform_indices = @transform_2, window_bounds = array<i64: 512, 128>}, {pipeline_mode = #tpu.pipeline_mode<synchronous>, transform_indices = @transform_3, window_bounds = array<i64: 1, 128>}, {transform_indices = @transform_4, window_bounds = array<i64: 16, 128>}]} {
    %c0 = arith.constant 0 : index
    %c0_0 = arith.constant 0 : index
    %0 = vector.load %arg1[%c0, %c0_0] : memref<16x512xf32, #tpu.memory_space<vmem>>, vector<16x512xf32>
    %c0_1 = arith.constant 0 : index
    %c0_2 = arith.constant 0 : index
    %1 = vector.load %arg2[%c0_1, %c0_2] : memref<2x512xf32, #tpu.memory_space<vmem>>, vector<1x512xf32>
    %c1 = arith.constant 1 : index
    %c0_3 = arith.constant 0 : index
    %2 = vector.load %arg2[%c1, %c0_3] : memref<2x512xf32, #tpu.memory_space<vmem>>, vector<1x512xf32>
    %3 = vector.broadcast %1 : vector<1x512xf32> to vector<16x512xf32>
    %4 = arith.mulf %0, %3 : vector<16x512xf32>
    %5 = vector.broadcast %2 : vector<1x512xf32> to vector<16x512xf32>
    %6 = arith.addf %4, %5 : vector<16x512xf32>
    %cst = arith.constant 0.000000e+00 : f32
    %7 = vector.broadcast %cst : f32 to vector<16x512xf32>
    %8 = arith.maximumf %6, %7 : vector<16x512xf32>
    %c0_4 = arith.constant 0 : index
    %c0_5 = arith.constant 0 : index
    %9 = vector.load %arg3[%c0_4, %c0_5] : memref<512x128xf32, #tpu.memory_space<vmem>>, vector<512x128xf32>
    %cst_6 = arith.constant dense<0.000000e+00> : vector<16x128xf32>
    %10 = tpu.matmul %8, %9, %cst_6 {dimension_numbers = #tpu.dot_dimension_numbers<[1], [0], [0], [1], [0, 0, 1, 1], [], []>} : vector<16x512xf32>, vector<512x128xf32>, vector<16x128xf32> -> vector<16x128xf32>
    %c0_7 = arith.constant 0 : index
    %c0_8 = arith.constant 0 : index
    %11 = vector.load %arg4[%c0_7, %c0_8] : memref<1x128xf32, #tpu.memory_space<vmem>>, vector<1x128xf32>
    %12 = vector.broadcast %11 : vector<1x128xf32> to vector<16x128xf32>
    %13 = arith.addf %10, %12 : vector<16x128xf32>
    %c0_9 = arith.constant 0 : index
    %c0_10 = arith.constant 0 : index
    %14 = vector.load %arg5[%c0_9, %c0_10] : memref<16x128xf32, #tpu.memory_space<vmem>>, vector<16x128xf32>
    tpu.vector_store %arg5[%c0_9, %c0_10], %13 {strides = array<i32>} : memref<16x128xf32, #tpu.memory_space<vmem>>, vector<16x128xf32>,
    return
  }
  func.func @transform_0(%arg0: i32) -> (i32, i32) {
    %c0_i32 = arith.constant 0 : i32
    %c0_i32_0 = arith.constant 0 : i32
    return %arg0, %c0_i32 : i32, i32
  }
  func.func @transform_1(%arg0: i32) -> (i32, i32) {
    %c0_i32 = arith.constant 0 : i32
    %c0_i32_0 = arith.constant 0 : i32
    %c0_i32_1 = arith.constant 0 : i32
    return %c0_i32, %c0_i32_0 : i32, i32
  }
  func.func @transform_2(%arg0: i32) -> (i32, i32) {
    %c0_i32 = arith.constant 0 : i32
    %c0_i32_0 = arith.constant 0 : i32
    %c0_i32_1 = arith.constant 0 : i32
    return %c0_i32, %c0_i32_0 : i32, i32
  }
  func.func @transform_3(%arg0: i32) -> (i32, i32) {
    %c0_i32 = arith.constant 0 : i32
    %c0_i32_0 = arith.constant 0 : i32
    %c0_i32_1 = arith.constant 0 : i32
    return %c0_i32, %c0_i32_0 : i32, i32
  }
  func.func @transform_4(%arg0: i32) -> (i32, i32) {
    %c0_i32 = arith.constant 0 : i32
    %c0_i32_0 = arith.constant 0 : i32
    return %arg0, %c0_i32 : i32, i32
  }
}

</mosaic_0001>

<bundles_post_ra>
// kernel: tpu_custom_call.1
= control target key start
LH: loop header
LB: loop body
LE: loop exit
PB: predicated region body
PF: predicated region fallthrough
CT: control target
= control target key end

     0   :  { %9 = vsyncpa [#allocation3], 0  ;;  %s606_s0 = inlined_call_operand.hbm [shape: f32[16,512], index: 0, kind: input, shape index: {}]   ;;  %s607_s1 = inlined_call_operand.hbm [shape: f32[2,512], index: 1, kind: input, shape index: {}]   ;;  %s608_s2 = inlined_call_operand.hbm [shape: f32[512,128], index: 2, kind: input, shape index: {}]   ;;  %s609_s3 = inlined_call_operand.vmem [shape: f32[1,128], index: 3, kind: input, shape index: {}]   ;;  %s610_s4 = inlined_call_operand.hbm [shape: f32[16,128], index: 4, kind: output, shape index: {}]  }
   0x1   :  { %10 = vsyncpa [#allocation6], 0 }
   0x2   :  { %11 = vsyncpa [#allocation4], 0  ;;  %s546_s15 = smov [#allocation5]   ;;  %s547_s17 = smov [#allocation2]  }
   0x3   :  { %s30_s16 = sshll.u32 %s546_s15, 4  ;;  %s17_s18 = sshll.u32 %s547_s17, 4  ;;  %s31_s16 = int_to_ptr.vmem [resolvable:$true] %s30_s16  ;;  %s18_s18 = int_to_ptr.vmem [resolvable:$true] %s17_s18 }
   0x4   :  { %s468_s19 = scalar_lea.vmem %s31_s16, 128  ;;  %p473_p1 = scmp.lt.s32.totalorder %s31_s16, %s31_s16 }
   0x5   :  { %p469_p0 = scmp.ne.s32.totalorder %s31_s16, %s468_s19  ;;  %p474_p2 = scmp.lt.s32.totalorder %s468_s19, %s468_s19 }
   0x7   :  { %p475_p3 = por %p474_p2, %p473_p1 }
   0x9   :  { %p476_p4 = pnand %p475_p3, %p469_p0 }
   0xb   :  { %479 = shalt.err (!%p476_p4)
}
   0xc   :  { %33 = dma.hbm_to_vmem [thread:$0]  %s607_s1, 128, %s31_s16, [#allocation6]  }
   0xd   :  { %s488_s22 = scalar_lea.vmem %s18_s18, 1024  ;;  %p493_p6 = scmp.lt.s32.totalorder %s18_s18, %s18_s18 }
   0xe   :  { %p489_p5 = scmp.ne.s32.totalorder %s18_s18, %s488_s22  ;;  %p494_p7 = scmp.lt.s32.totalorder %s488_s22, %s488_s22 }
  0x10   :  { %p495_p8 = por %p494_p7, %p493_p6 }
  0x12   :  { %p496_p9 = pnand %p495_p8, %p489_p5 }
  0x14   :  { %499 = shalt.err (!%p496_p9)
}
  0x15   :  { %s548_s23 = smov 512   ;;  %s549_s24 = smov 32  }
  0x16   :  { %23 = dma.hbm_to_vmem [thread:$0]  %s606_s0, 1024, %s18_s18, [#allocation3], %s548_s23, %s548_s23, %s549_s24  }
  0x17   :  { %s550_s27 = smov [#allocation7]  }
  0x18   :  { %s39_s28 = sshll.u32 %s550_s27, 4  ;;  %s40_s28 = int_to_ptr.vmem [resolvable:$true] %s39_s28 }
  0x19   :  { %s508_s29 = scalar_lea.vmem %s40_s28, 8192  ;;  %p513_p11 = scmp.lt.s32.totalorder %s40_s28, %s40_s28 }
  0x1a   :  { %p509_p10 = scmp.ne.s32.totalorder %s40_s28, %s508_s29  ;;  %p514_p12 = scmp.lt.s32.totalorder %s508_s29, %s508_s29 }
  0x1c   :  { %p515_p13 = por %p514_p12, %p513_p11 }
  0x1e   :  { %p516_p0 = pnand %p515_p13, %p509_p10 }
  0x20   :  { %519 = shalt.err (!%p516_p0)
}
  0x21   :  { %s551_s1 = smov 128   ;;  %s552_s30 = smov 8  }
  0x22   :  { %45 = dma.hbm_to_vmem [thread:$0]  %s608_s2, 8192, %s40_s28, [#allocation6], %s551_s1, %s551_s1, %s552_s30  }
  0x23   :  { %540 = dma.done.wait [#allocation3], 1024  }
  0x24   :  { %541 = vsyncadd [#allocation3], 4294966272 }
  0x25   :  { %542 = dma.done.wait [#allocation6], 8320  }
  0x26   :  { %543 = vsyncadd [#allocation6], 4294958976  ;;  %v165_v0 = vld [vmem:[#allocation7 + $0xf8] sm:$0xff]  ;;  %v164_v4 = vld [vmem:[#allocation7 + $0xf0] sm:$0xff]  ;;  %v69_v26 = vlaneseq  ;;  %s553_s7 = smov [#allocation8]  }
  0x27   :  { %v197_v1 = vld [vmem:[#allocation7 + $0x1f8] sm:$0xff]  ;;  %376 = vmatprep.subr.mxu0 %v165_v0  ;;  %v196_v5 = vld [vmem:[#allocation7 + $0x1f0] sm:$0xff]  ;;  %v163_v8 = vld [vmem:[#allocation7 + $0xe8] sm:$0xff]  ;;  %s362_s8 = sshll.u32 %s553_s7, 4  ;;  %s363_s8 = int_to_ptr.vmem [resolvable:$true] %s362_s8 }
  0x28   :  { %v149_v2 = vld [vmem:[#allocation7 + $0x78] sm:$0xff]  ;;  %414 = vmatprep.subr.mxu1 %v197_v1  ;;  %v148_v6 = vld [vmem:[#allocation7 + $0x70] sm:$0xff]  ;;  %v195_v9 = vld [vmem:[#allocation7 + $0x1e8] sm:$0xff]  ;;  %v591_v35 = vshrl.u32 %v69_v26, 7  ;;  %p525_p2 = scmp.lt.s32.totalorder %s363_s8, %s363_s8 }
  0x29   :  { %v181_v3 = vld [vmem:[#allocation7 + $0x178] sm:$0xff]  ;;  %377 = vmatpush3.msra.mxu0 %v149_v2  ;;  %v180_v7 = vld [vmem:[#allocation7 + $0x170] sm:$0xff]  ;;  %v147_v10 = vld [vmem:[#allocation7 + $0x68] sm:$0xff] }
  0x2a   :  { %415 = vmatpush3.msra.mxu1 %v181_v3  ;;  %378 = vmatprep.subr.mxu0 %v164_v4  ;;  %v179_v11 = vld [vmem:[#allocation7 + $0x168] sm:$0xff]  ;;  %v162_v12 = vld [vmem:[#allocation7 + $0xe0] sm:$0xff]  ;;  %v161_v16 = vld [vmem:[#allocation7 + $0xd8] sm:$0xff]  ;;  %v75_v46 = vsub.s32 1, %v591_v35  ;;  %v83_v47 = vsub.s32 3, %v591_v35  ;;  %v71_v48 = vsub.s32 0, %v591_v35 }
  0x2b   :  { %416 = vmatprep.subr.mxu1 %v196_v5  ;;  %379 = vmatpush3.msra.mxu0 %v148_v6  ;;  %v194_v13 = vld [vmem:[#allocation7 + $0x1e0] sm:$0xff]  ;;  %v193_v17 = vld [vmem:[#allocation7 + $0x1d8] sm:$0xff]  ;;  %v160_v20 = vld [vmem:[#allocation7 + $0xd0] sm:$0xff]  ;;  %v79_v58 = vsub.s32 2, %v591_v35 }
  0x2c   :  { %417 = vmatpush3.msra.mxu1 %v180_v7  ;;  %380 = vmatprep.subr.mxu0 %v163_v8  ;;  %v146_v14 = vld [vmem:[#allocation7 + $0x60] sm:$0xff]  ;;  %v145_v18 = vld [vmem:[#allocation7 + $0x58] sm:$0xff]  ;;  %v192_v21 = vld [vmem:[#allocation7 + $0x1d0] sm:$0xff] }
  0x2d   :  { %418 = vmatprep.subr.mxu1 %v195_v9  ;;  %v178_v15 = vld [vmem:[#allocation7 + $0x160] sm:$0xff]  ;;  %381 = vmatpush3.msra.mxu0 %v147_v10  ;;  %v177_v19 = vld [vmem:[#allocation7 + $0x158] sm:$0xff]  ;;  %v144_v22 = vld [vmem:[#allocation7 + $0x50] sm:$0xff] }
  0x2e   :  { %419 = vmatpush3.msra.mxu1 %v179_v11  ;;  %382 = vmatprep.subr.mxu0 %v162_v12  ;;  %v176_v23 = vld [vmem:[#allocation7 + $0x150] sm:$0xff]  ;;  %v159_v24 = vld [vmem:[#allocation7 + $0xc8] sm:$0xff]  ;;  %v158_v29 = vld [vmem:[#allocation7 + $0xc0] sm:$0xff] }
  0x2f   :  { %420 = vmatprep.subr.mxu1 %v194_v13  ;;  %383 = vmatpush3.msra.mxu0 %v146_v14  ;;  %v191_v25 = vld [vmem:[#allocation7 + $0x1c8] sm:$0xff]  ;;  %v190_v30 = vld [vmem:[#allocation7 + $0x1c0] sm:$0xff]  ;;  %v157_v33 = vld [vmem:[#allocation7 + $0xb8] sm:$0xff] }
  0x30   :  { %421 = vmatpush3.msra.mxu1 %v178_v15  ;;  %384 = vmatprep.subr.mxu0 %v161_v16  ;;  %v143_v27 = vld [vmem:[#allocation7 + $0x48] sm:$0xff]  ;;  %v142_v31 = vld [vmem:[#allocation7 + $0x40] sm:$0xff]  ;;  %v189_v34 = vld [vmem:[#allocation7 + $0x1b8] sm:$0xff] }
  0x31   :  { %422 = vmatprep.subr.mxu1 %v193_v17  ;;  %385 = vmatpush3.msra.mxu0 %v145_v18  ;;  %v175_v28 = vld [vmem:[#allocation7 + $0x148] sm:$0xff]  ;;  %v174_v32 = vld [vmem:[#allocation7 + $0x140] sm:$0xff]  ;;  %v141_v36 = vld [vmem:[#allocation7 + $0x38] sm:$0xff] }
  0x32   :  { %423 = vmatpush3.msra.mxu1 %v177_v19  ;;  %386 = vmatprep.subr.mxu0 %v160_v20  ;;  %v173_v37 = vld [vmem:[#allocation7 + $0x138] sm:$0xff]  ;;  %v156_v38 = vld [vmem:[#allocation7 + $0xb0] sm:$0xff]  ;;  %v155_v42 = vld [vmem:[#allocation7 + $0xa8] sm:$0xff] }
  0x33   :  { %424 = vmatprep.subr.mxu1 %v192_v21  ;;  %387 = vmatpush3.msra.mxu0 %v144_v22  ;;  %v188_v39 = vld [vmem:[#allocation7 + $0x1b0] sm:$0xff]  ;;  %v187_v43 = vld [vmem:[#allocation7 + $0x1a8] sm:$0xff]  ;;  %v154_v49 = vld [vmem:[#allocation7 + $0xa0] sm:$0xff] }
  0x34   :  { %425 = vmatpush3.msra.mxu1 %v176_v23  ;;  %388 = vmatprep.subr.mxu0 %v159_v24  ;;  %v140_v40 = vld [vmem:[#allocation7 + $0x30] sm:$0xff]  ;;  %v139_v44 = vld [vmem:[#allocation7 + $0x28] sm:$0xff]  ;;  %v186_v50 = vld [vmem:[#allocation7 + $0x1a0] sm:$0xff] }
  0x35   :  { %426 = vmatprep.subr.mxu1 %v191_v25  ;;  %389 = vmatpush3.msra.mxu0 %v143_v27  ;;  %v172_v41 = vld [vmem:[#allocation7 + $0x130] sm:$0xff]  ;;  %v171_v45 = vld [vmem:[#allocation7 + $0x128] sm:$0xff]  ;;  %v138_v51 = vld [vmem:[#allocation7 + $0x20] sm:$0xff] }
  0x36   :  { %427 = vmatpush3.msra.mxu1 %v175_v28  ;;  %390 = vmatprep.subr.mxu0 %v158_v29  ;;  %v170_v52 = vld [vmem:[#allocation7 + $0x120] sm:$0xff]  ;;  %v153_v53 = vld [vmem:[#allocation7 + $0x98] sm:$0xff]  ;;  %v60_v61 = vld [vmem:[#allocation2 + $0x18] sm:$0xff] }
  0x37   :  { %428 = vmatprep.subr.mxu1 %v190_v30  ;;  %391 = vmatpush3.msra.mxu0 %v142_v31  ;;  %v185_v54 = vld [vmem:[#allocation7 + $0x198] sm:$0xff]  ;;  %v58_v56 = vld [vmem:[#allocation2 + $0x8] sm:$0xff]  ;;  %v152_v2 = vld [vmem:[#allocation7 + $0x90] sm:$0xff] }
  0x38   :  { %429 = vmatpush3.msra.mxu1 %v174_v32  ;;  %392 = vmatprep.subr.mxu0 %v157_v33  ;;  %v137_v55 = vld [vmem:[#allocation7 + $0x18] sm:$0xff]  ;;  %v62_v6 = vld [vmem:[#allocation2 + $0x28] sm:$0xff]  ;;  %v184_v7 = vld [vmem:[#allocation7 + $0x190] sm:$0xff] }
  0x39   :  { %430 = vmatprep.subr.mxu1 %v189_v34  ;;  %393 = vmatpush3.msra.mxu0 %v141_v36  ;;  %v65_v57 = vld [vmem:[#allocation5] ss:$2 sm:$0xf]  ;;  %v67_v59 = vld [vmem:[#allocation5 + $0x1] ss:$2 sm:$0xf] }
  0x3a   :  { %431 = vmatpush3.msra.mxu1 %v173_v37  ;;  %394 = vmatprep.subr.mxu0 %v156_v38  ;;  %v76_v60 = vrot.slane %v65_v57, %v75_v46  ;;  %v84_v62 = vrot.slane %v65_v57, %v83_v47  ;;  %v57_v63 = vld [vmem:[#allocation2] sm:$0xff]  ;;  %v72_v0 = vrot.slane %v65_v57, %v71_v48  ;;  %v59_v11 = vld [vmem:[#allocation2 + $0x10] sm:$0xff]  ;;  %v64_v12 = vld [vmem:[#allocation2 + $0x38] sm:$0xff] }
  0x3b   :  { %432 = vmatprep.subr.mxu1 %v188_v39  ;;  %395 = vmatpush3.msra.mxu0 %v140_v40  ;;  %v169_v1 = vld [vmem:[#allocation7 + $0x118] sm:$0xff]  ;;  %v105_v3 = vrot.slane %v67_v59, %v75_v46  ;;  %v113_v4 = vrot.slane %v67_v59, %v83_v47  ;;  %v101_v5 = vrot.slane %v67_v59, %v71_v48  ;;  %v136_v13 = vld [vmem:[#allocation7 + $0x10] sm:$0xff]  ;;  %v151_v19 = vld [vmem:[#allocation7 + $0x88] sm:$0xff] }
  0x3c   :  { %433 = vmatpush3.msra.mxu1 %v172_v41  ;;  %396 = vmatprep.subr.mxu0 %v155_v42  ;;  %v90_v8 = vmul.f32 %v76_v60, %v58_v56  ;;  %v92_v9 = vmul.f32 %v84_v62, %v60_v61  ;;  %v89_v10 = vmul.f32 %v72_v0, %v57_v63  ;;  %v168_v14 = vld [vmem:[#allocation7 + $0x110] sm:$0xff]  ;;  %v61_v18 = vld [vmem:[#allocation2 + $0x20] sm:$0xff]  ;;  %v183_v20 = vld [vmem:[#allocation7 + $0x188] sm:$0xff] }
  0x3d   :  { %434 = vmatprep.subr.mxu1 %v187_v43  ;;  %397 = vmatpush3.msra.mxu0 %v139_v44  ;;  %v80_v15 = vrot.slane %v65_v57, %v79_v58  ;;  %v109_v16 = vrot.slane %v67_v59, %v79_v58  ;;  %v94_v17 = vmul.f32 %v76_v60, %v62_v6  ;;  %v63_v24 = vld [vmem:[#allocation2 + $0x30] sm:$0xff]  ;;  %v150_v30 = vld [vmem:[#allocation7 + $0x80] sm:$0xff] }
  0x3e   :  { %435 = vmatpush3.msra.mxu1 %v171_v45  ;;  %398 = vmatprep.subr.mxu0 %v154_v49  ;;  %v119_v21 = vadd.f32 %v105_v3, %v90_v8  ;;  %v121_v22 = vadd.f32 %v113_v4, %v92_v9  ;;  %v118_v23 = vadd.f32 %v101_v5, %v89_v10  ;;  %v135_v25 = vld [vmem:[#allocation7 + $0x8] sm:$0xff]  ;;  %v182_v31 = vld [vmem:[#allocation7 + $0x180] sm:$0xff] }
  0x3f   :  { %436 = vmatprep.subr.mxu1 %v186_v50  ;;  %399 = vmatpush3.msra.mxu0 %v138_v51  ;;  %v167_v26 = vld [vmem:[#allocation7 + $0x108] sm:$0xff]  ;;  %v91_v27 = vmul.f32 %v80_v15, %v59_v11  ;;  %v123_v28 = vadd.f32 %v105_v3, %v94_v17  ;;  %v96_v29 = vmul.f32 %v84_v62, %v64_v12  ;;  %v134_v34 = vld [vmem:[#allocation7] sm:$0xff]  ;;  %v375_v50 = vld [vmem:[%s609_s3] ss:$0 sm:$0xff]  ;;  %s520_s3 = scalar_lea.vmem %s363_s8, 256 }
  0x40   :  { %437 = vmatpush3.msra.mxu1 %v170_v52  ;;  %400 = vmatprep.subr.mxu0 %v153_v53  ;;  %v127_v32 = vmax.f32 %v119_v21, 0.0  ;;  %v93_v33 = vmul.f32 %v72_v0, %v61_v18  ;;  %v129_v35 = vmax.f32 %v121_v22, 0.0  ;;  %v95_v38 = vmul.f32 %v80_v15, %v63_v24  ;;  %v166_v39 = vld [vmem:[#allocation7 + $0x100] sm:$0xff]  ;;  %p521_p1 = scmp.ne.s32.totalorder %s363_s8, %s520_s3  ;;  %p526_p3 = scmp.lt.s32.totalorder %s520_s3, %s520_s3 }
  0x41   :  { %438 = vmatprep.subr.mxu1 %v185_v54  ;;  %401 = vmatpush3.msra.mxu0 %v137_v55  ;;  %v120_v36 = vadd.f32 %v109_v16, %v91_v27  ;;  %v125_v37 = vadd.f32 %v113_v4, %v96_v29  ;;  %v126_v40 = vmax.f32 %v118_v23, 0.0  ;;  %v131_v43 = vmax.f32 %v123_v28, 0.0 }
  0x42   :  { %439 = vmatpush3.msra.mxu1 %v169_v1  ;;  %402 = vmatprep.subr.mxu0 %v152_v2  ;;  %v122_v41 = vadd.f32 %v101_v5, %v93_v33  ;;  %v124_v45 = vadd.f32 %v109_v16, %v95_v38  ;;  %p527_p4 = por %p526_p3, %p525_p2 }
  0x43   :  { %440 = vmatprep.subr.mxu1 %v184_v7  ;;  %403 = vmatpush3.msra.mxu0 %v136_v13  ;;  %v128_v42 = vmax.f32 %v120_v36, 0.0  ;;  %v133_v44 = vmax.f32 %v125_v37, 0.0 }
  0x44   :  { %441 = vmatpush3.msra.mxu1 %v168_v14  ;;  %404 = vmatprep.subr.mxu0 %v151_v19  ;;  %v130_v46 = vmax.f32 %v122_v41, 0.0  ;;  %v132_v47 = vmax.f32 %v124_v45, 0.0  ;;  %p528_p5 = pnand %p527_p4, %p521_p1 }
  0x45   :  { %442 = vmatprep.subr.mxu1 %v183_v20  ;;  %405 = vmatpush3.msra.mxu0 %v135_v25 }
  0x46   :  { %443 = vmatpush3.msra.mxu1 %v167_v26  ;;  %406 = vmatprep.subr.mxu0 %v150_v30 }
  0x47   :  { %444 = vmatprep.subr.mxu1 %v182_v31  ;;  %407 = vmatpush3.msra.mxu0 %v134_v34 }
  0x48   :  { %269 = vmatprep.mubr.f32.mxu0 %v127_v32  ;;  %445 = vmatpush3.msra.mxu1 %v166_v39 }
  0x49   :  { %344 = vmatprep.mubr.f32.mxu1 %v129_v35  ;;  %270 = vmatmul.mubr.f32.vlgmr.msra.gmra.mxu0 %v126_v40 }
  0x4a   :  { %345 = vmatmul.mubr.f32.vlgmr.msra.gmra.mxu1 %v128_v42  ;;  %274 = vmatprep.mubr.f32.mxu0 %v131_v43 }
  0x4b   :  { %349 = vmatprep.mubr.f32.mxu1 %v133_v44 }
  0x4d   :  { %275 = vmatmul.mubr.f32.gmra.mxu0 %v130_v46 }
  0x4e   :  { %350 = vmatmul.mubr.f32.gmra.mxu1 %v132_v47 }
 0x109   :  { %v408_v48 = vpop.f32.mrf.mxu0 }
 0x10a   :  { %v446_v49 = vpop.f32.mrf.mxu1 }
 0x10b   :  { %v409_v51 = vpop.f32.mrf.mxu0 }
 0x10c   :  { %v447_v52 = vpop.f32.mrf.mxu1  ;;  %v410_v53 = vadd.f32 %v409_v51, %v408_v48 }
 0x10d   :  { %v411_v54 = vpop.f32.mrf.mxu0  ;;  %v448_v57 = vadd.f32 %v447_v52, %v446_v49 }
 0x10e   :  { %v449_v55 = vpop.f32.mrf.mxu1  ;;  %v272_v56 = vadd.f32 %v410_v53, %v375_v50 }
 0x10f   :  { %v412_v58 = vpop.f32.mrf.mxu0 }
 0x110   :  { %v450_v59 = vpop.f32.mrf.mxu1  ;;  %v347_v60 = vadd.f32 %v448_v57, %v272_v56  ;;  %v413_v61 = vadd.f32 %v412_v58, %v411_v54 }
 0x111   :  { %v451_v63 = vadd.f32 %v450_v59, %v449_v55 }
 0x112   :  { %355 = vst [vmem:[#allocation8] sm:$0xff] %v347_v60  ;;  %v277_v62 = vadd.f32 %v413_v61, %v375_v50 }
 0x114   :  { %v352_v0 = vadd.f32 %v451_v63, %v277_v62 }
 0x116   :  { %356 = vst [vmem:[#allocation8 + $0x8] sm:$0xff] %v352_v0 }
 0x117   :  { %531 = shalt.err (!%p528_p5)
}
 0x118   :  { %368 = dma.vmem_to_hbm [thread:$0]  %s363_s8, 256, %s610_s4, [#allocation4], %s551_s1, %s551_s1, %s552_s30  }
 0x119   :  { %544 = dma.done.wait [#allocation4], 256  }
 0x11a   :  { %545 = vsyncadd [#allocation4], 4294967040 }
 0x11b   :  { %372 = vsyncpa [#allocation3], 1 }
 0x11c   :  { %373 = vsyncpa [#allocation6], 1 }
 0x11d   :  { %374 = vsyncpa [#allocation4], 1 }

</bundles_post_ra>
